<compile_context>
chip_gen: v7x
topology: tpu7x:2x2x1
jax: 0.10.0
libtpu: 0.0.40
codegen_flags: <defaults>
</compile_context>

<pallas_src>
import functools

import jax
import jax.numpy as jnp
from jax.experimental import pallas as pl
from jax.experimental.pallas import tpu as pltpu

BN_EPS = 1e-5
_VMEM_LIMIT = 48 * 1024 * 1024          # below v7x 64 MiB physical
_FUSED_VMEM_BUDGET = 40 * 1024 * 1024   # conservative fit check for fused path


def _round_up(n, m):
    return ((n + m - 1) // m) * m


def _pad_to(a, shape):
    pads = [(0, t - s) for s, t in zip(a.shape, shape)]
    if all(p == (0, 0) for p in pads):
        return a
    return jnp.pad(a, pads)


def _pick_batch_tile(batch):
    for t in (256, 128, 64, 32, 16, 8):
        if batch % t == 0:
            return t
    return batch  # block equals the full dim (allowed by Pallas)


def _fused_vmem_bytes(B, IN_p, HID_p, OUT_p):
    """Conservative VMEM estimate for the single fused kernel (2x in/out for
    Pallas buffering + f32/bf16 elementwise temporaries)."""
    bf16, f32 = 2, 4
    io = (B * IN_p * bf16 + IN_p * HID_p * bf16 + HID_p * OUT_p * bf16
          + 2 * HID_p * f32 + 2 * OUT_p * f32 + B * OUT_p * f32)
    inter = 3 * B * HID_p * f32 + B * HID_p * bf16 + 3 * B * OUT_p * f32
    return 2 * io + inter


# --------------------------- fused kernel -----------------------------------


def _fused_kernel(x_ref, w1_ref, g1_ref, b1_ref, w2_ref, g2_ref, b2_ref, o_ref):
    """Whole head in VMEM: matmul1 -> BN1 -> ReLU -> matmul2 -> BN2."""
    h = jnp.dot(x_ref[...], w1_ref[...], preferred_element_type=jnp.float32)
    m1 = jnp.mean(h, axis=0, keepdims=True)
    v1 = jnp.mean((h - m1) * (h - m1), axis=0, keepdims=True)
    s1 = g1_ref[...] * jax.lax.rsqrt(v1 + BN_EPS)
    a = jnp.maximum(h * s1 + (b1_ref[...] - m1 * s1), 0.0)

    z = jnp.dot(a.astype(jnp.bfloat16), w2_ref[...],
                preferred_element_type=jnp.float32)
    m2 = jnp.mean(z, axis=0, keepdims=True)
    v2 = jnp.mean((z - m2) * (z - m2), axis=0, keepdims=True)
    s2 = g2_ref[...] * jax.lax.rsqrt(v2 + BN_EPS)
    o_ref[...] = (z * s2 + (b2_ref[...] - m2 * s2)).astype(o_ref.dtype)


# --------------------------- tiled fallback kernels --------------------------


def _stage1_kernel(x_ref, w1_ref, h_ref, sum1_ref, sq1_ref):
    """h = x @ w1 (bf16 MXU, f32 acc); accumulate per-feature sum / sum-sq."""
    @pl.when(pl.program_id(0) == 0)
    def _():
        sum1_ref[...] = jnp.zeros_like(sum1_ref)
        sq1_ref[...] = jnp.zeros_like(sq1_ref)

    h = jnp.dot(x_ref[...], w1_ref[...], preferred_element_type=jnp.float32)
    h_ref[...] = h
    sum1_ref[...] += jnp.sum(h, axis=0, keepdims=True)
    sq1_ref[...] += jnp.sum(h * h, axis=0, keepdims=True)


def _stage2_kernel(inv_b, sum1_ref, sq1_ref, g1_ref, b1_ref, h_ref, w2_ref,
                   z_ref, sum2_ref, sq2_ref, scale_ref, shift_ref):
    """BN1 folded to scale/shift FMA -> ReLU -> z = a @ w2; accumulate z stats."""
    @pl.when(pl.program_id(0) == 0)
    def _():
        mean = sum1_ref[...] * inv_b
        # single-pass variance (f32 accumulation); clamp tiny negatives from
        # cancellation -- activations here are roughly zero-mean so this is safe.
        var = jnp.maximum(sq1_ref[...] * inv_b - mean * mean, 0.0)
        scale = g1_ref[...] * jax.lax.rsqrt(var + BN_EPS)
        scale_ref[...] = scale
        shift_ref[...] = b1_ref[...] - mean * scale
        sum2_ref[...] = jnp.zeros_like(sum2_ref)
        sq2_ref[...] = jnp.zeros_like(sq2_ref)

    a = jnp.maximum(h_ref[...] * scale_ref[...] + shift_ref[...], 0.0)
    z = jnp.dot(a.astype(jnp.bfloat16), w2_ref[...],
                preferred_element_type=jnp.float32)
    z_ref[...] = z
    sum2_ref[...] += jnp.sum(z, axis=0, keepdims=True)
    sq2_ref[...] += jnp.sum(z * z, axis=0, keepdims=True)


def _stage3_kernel(inv_b, sum2_ref, sq2_ref, g2_ref, b2_ref, z_ref, o_ref,
                   scale_ref, shift_ref):
    """BN2 as one FMA per tile with scale/shift derived once."""
    @pl.when(pl.program_id(0) == 0)
    def _():
        mean = sum2_ref[...] * inv_b
        var = jnp.maximum(sq2_ref[...] * inv_b - mean * mean, 0.0)
        scale = g2_ref[...] * jax.lax.rsqrt(var + BN_EPS)
        scale_ref[...] = scale
        shift_ref[...] = b2_ref[...] - mean * scale

    o_ref[...] = (z_ref[...] * scale_ref[...] + shift_ref[...]).astype(o_ref.dtype)


# --------------------------- wrapper ----------------------------------------


@functools.partial(jax.jit, static_argnames=("force_tiled",))
def projection_head_forward(x, w1, gamma1, beta1, w2, gamma2, beta2, *,
                            force_tiled=False):
    """x: [B, in]; w1: [in, hidden]; w2: [hidden, out] (pre-transposed);
    gamma/beta: [1, hidden] / [1, out]."""
    B, IN = x.shape
    HID = w1.shape[1]
    OUT = w2.shape[1]
    IN_p, HID_p, OUT_p = (_round_up(d, 128) for d in (IN, HID, OUT))

    # Lane-pad features to 128; feed the MXU bf16 operands (halves DMA bytes).
    x_p = _pad_to(x, (B, IN_p)).astype(jnp.bfloat16)
    w1_p = _pad_to(w1, (IN_p, HID_p)).astype(jnp.bfloat16)
    w2_p = _pad_to(w2, (HID_p, OUT_p)).astype(jnp.bfloat16)
    g1_p = _pad_to(gamma1.astype(jnp.float32), (1, HID_p))
    b1_p = _pad_to(beta1.astype(jnp.float32), (1, HID_p))
    g2_p = _pad_to(gamma2.astype(jnp.float32), (1, OUT_p))
    b2_p = _pad_to(beta2.astype(jnp.float32), (1, OUT_p))

    cparams = pltpu.CompilerParams(
        dimension_semantics=("arbitrary",), vmem_limit_bytes=_VMEM_LIMIT)

    use_fused = (not force_tiled) and (
        _fused_vmem_bytes(B, IN_p, HID_p, OUT_p) <= _FUSED_VMEM_BUDGET)

    if use_fused:
        # ---- Single fused kernel: no HBM round-trips for h / z. ----
        out_p = pl.pallas_call(
            _fused_kernel,
            grid=(1,),
            in_specs=[
                pl.BlockSpec((B, IN_p), lambda i: (0, 0)),
                pl.BlockSpec((IN_p, HID_p), lambda i: (0, 0)),
                pl.BlockSpec((1, HID_p), lambda i: (0, 0)),
                pl.BlockSpec((1, HID_p), lambda i: (0, 0)),
                pl.BlockSpec((HID_p, OUT_p), lambda i: (0, 0)),
                pl.BlockSpec((1, OUT_p), lambda i: (0, 0)),
                pl.BlockSpec((1, OUT_p), lambda i: (0, 0)),
            ],
            out_specs=pl.BlockSpec((B, OUT_p), lambda i: (0, 0)),
            out_shape=jax.ShapeDtypeStruct((B, OUT_p), jnp.float32),
            compiler_params=cparams,
            cost_estimate=pl.CostEstimate(
                flops=2 * B * IN_p * HID_p + 2 * B * HID_p * OUT_p
                      + 10 * B * HID_p + 10 * B * OUT_p,
                transcendentals=HID_p + OUT_p,
                bytes_accessed=2 * B * IN_p + 2 * IN_p * HID_p
                               + 2 * HID_p * OUT_p + 8 * HID_p + 8 * OUT_p
                               + 4 * B * OUT_p),
        )(x_p, w1_p, g1_p, b1_p, w2_p, g2_p, b2_p)
        return out_p[:, :OUT]

    # ---- Tiled fallback: batch-streamed, full-batch-correct BN. ----
    Bt = _pick_batch_tile(B)
    nb = B // Bt
    inv_b = 1.0 / B

    # Stage 1: h = x @ w1, plus per-feature sum / sum-of-squares.
    h, s1, q1 = pl.pallas_call(
        _stage1_kernel,
        grid=(nb,),
        in_specs=[
            pl.BlockSpec((Bt, IN_p), lambda i: (i, 0)),
            pl.BlockSpec((IN_p, HID_p), lambda i: (0, 0)),
        ],
        out_specs=(
            pl.BlockSpec((Bt, HID_p), lambda i: (i, 0)),
            pl.BlockSpec((1, HID_p), lambda i: (0, 0)),
            pl.BlockSpec((1, HID_p), lambda i: (0, 0)),
        ),
        out_shape=(
            jax.ShapeDtypeStruct((B, HID_p), jnp.float32),
            jax.ShapeDtypeStruct((1, HID_p), jnp.float32),
            jax.ShapeDtypeStruct((1, HID_p), jnp.float32),
        ),
        compiler_params=cparams,
        cost_estimate=pl.CostEstimate(
            flops=2 * B * IN_p * HID_p + 4 * B * HID_p,
            transcendentals=0,
            bytes_accessed=2 * B * IN_p + 2 * IN_p * HID_p
                           + 4 * B * HID_p + 8 * HID_p),
    )(x_p, w1_p)

    # Stage 2: BN1 (scale/shift) -> ReLU -> z = a @ w2, plus z stats.
    z, s2, q2 = pl.pallas_call(
        functools.partial(_stage2_kernel, inv_b),
        grid=(nb,),
        in_specs=[
            pl.BlockSpec((1, HID_p), lambda i: (0, 0)),
            pl.BlockSpec((1, HID_p), lambda i: (0, 0)),
            pl.BlockSpec((1, HID_p), lambda i: (0, 0)),
            pl.BlockSpec((1, HID_p), lambda i: (0, 0)),
            pl.BlockSpec((Bt, HID_p), lambda i: (i, 0)),
            pl.BlockSpec((HID_p, OUT_p), lambda i: (0, 0)),
        ],
        out_specs=(
            pl.BlockSpec((Bt, OUT_p), lambda i: (i, 0)),
            pl.BlockSpec((1, OUT_p), lambda i: (0, 0)),
            pl.BlockSpec((1, OUT_p), lambda i: (0, 0)),
        ),
        out_shape=(
            jax.ShapeDtypeStruct((B, OUT_p), jnp.float32),
            jax.ShapeDtypeStruct((1, OUT_p), jnp.float32),
            jax.ShapeDtypeStruct((1, OUT_p), jnp.float32),
        ),
        scratch_shapes=[pltpu.VMEM((1, HID_p), jnp.float32),
                        pltpu.VMEM((1, HID_p), jnp.float32)],
        compiler_params=cparams,
        cost_estimate=pl.CostEstimate(
            flops=2 * B * HID_p * OUT_p + 7 * B * HID_p + 4 * B * OUT_p,
            transcendentals=HID_p,
            bytes_accessed=4 * B * HID_p + 2 * HID_p * OUT_p + 4 * B * OUT_p
                           + 24 * HID_p + 8 * OUT_p),
    )(s1, q1, g1_p, b1_p, h, w2_p)

    # Stage 3: BN2 as a single FMA pass over z (lane-dense output).
    out_p = pl.pallas_call(
        functools.partial(_stage3_kernel, inv_b),
        grid=(nb,),
        in_specs=[
            pl.BlockSpec((1, OUT_p), lambda i: (0, 0)),
            pl.BlockSpec((1, OUT_p), lambda i: (0, 0)),
            pl.BlockSpec((1, OUT_p), lambda i: (0, 0)),
            pl.BlockSpec((1, OUT_p), lambda i: (0, 0)),
            pl.BlockSpec((Bt, OUT_p), lambda i: (i, 0)),
        ],
        out_specs=pl.BlockSpec((Bt, OUT_p), lambda i: (i, 0)),
        out_shape=jax.ShapeDtypeStruct((B, OUT_p), jnp.float32),
        scratch_shapes=[pltpu.VMEM((1, OUT_p), jnp.float32),
                        pltpu.VMEM((1, OUT_p), jnp.float32)],
        compiler_params=cparams,
        cost_estimate=pl.CostEstimate(
            flops=2 * B * OUT_p,
            transcendentals=OUT_p,
            bytes_accessed=8 * B * OUT_p + 24 * OUT_p),
    )(s2, q2, g2_p, b2_p, z)

    return out_p[:, :OUT]


# --------------------------- params / demo ----------------------------------


def init_params(key, in_features, hidden_features, out_features):
    k1, k2 = jax.random.split(key, 2)
    # PyTorch nn.Linear init: uniform(-1/sqrt(fan_in), 1/sqrt(fan_in)),
    # weight stored [out, in]; pre-transpose to [in, out] for the kernel.
    bound1 = 1.0 / jnp.sqrt(in_features)
    bound2 = 1.0 / jnp.sqrt(hidden_features)
    w1 = jax.random.uniform(k1, (hidden_features, in_features), jnp.float32,
                            -bound1, bound1).T
    w2 = jax.random.uniform(k2, (out_features, hidden_features), jnp.float32,
                            -bound2, bound2).T
    gamma1 = jnp.ones((1, hidden_features), jnp.float32)
    beta1 = jnp.zeros((1, hidden_features), jnp.float32)
    gamma2 = jnp.ones((1, out_features), jnp.float32)
    beta2 = jnp.zeros((1, out_features), jnp.float32)
    return w1, gamma1, beta1, w2, gamma2, beta2


if __name__ == "__main__":
    # Small shapes; B=48 -> batch tile of 16 -> 3 grid steps in the tiled path
    # (exercises the cross-tile BN stats accumulation).
    B, IN, HID, OUT = 48, 32, 64, 32

    key = jax.random.PRNGKey(0)
    kx, kp = jax.random.split(key)
    x = jax.random.normal(kx, (B, IN), jnp.float32)
    params = init_params(kp, IN, HID, OUT)

    # Pure-JAX reference mirroring the kernel's bf16-matmul / f32-BN semantics.
    w1, g1, b1, w2, g2, b2 = params
    h = jnp.dot(x.astype(jnp.bfloat16), w1.astype(jnp.bfloat16),
                preferred_element_type=jnp.float32)
    m1 = h.mean(0, keepdims=True)
    v1 = ((h - m1) ** 2).mean(0, keepdims=True)
    h = (h - m1) * jax.lax.rsqrt(v1 + BN_EPS) * g1 + b1
    h = jnp.maximum(h, 0.0)
    z = jnp.dot(h.astype(jnp.bfloat16), w2.astype(jnp.bfloat16),
                preferred_element_type=jnp.float32)
    m2 = z.mean(0, keepdims=True)
    v2 = ((z - m2) ** 2).mean(0, keepdims=True)
    ref = (z - m2) * jax.lax.rsqrt(v2 + BN_EPS) * g2 + b2

    # Fused (default at these shapes) and tiled fallback paths.
    out_fused = jax.block_until_ready(projection_head_forward(x, *params))
    out_tiled = jax.block_until_ready(
        projection_head_forward(x, *params, force_tiled=True))

    for out in (out_fused, out_tiled):
        assert out.shape == (B, OUT)
        max_err = float(jnp.max(jnp.abs(out - ref)))
        assert jnp.allclose(out, ref, atol=1e-2, rtol=1e-2), max_err

    print("KERNEL_OK")
</pallas_src>

<mosaic_0001>
module attributes {stable_mosaic.version = 11 : i64} {
  func.func @_fused_kernel(%arg0: i32, %arg1: memref<48x128xbf16, #tpu.memory_space<vmem>>, %arg2: memref<128x128xbf16, #tpu.memory_space<vmem>>, %arg3: memref<1x128xf32, #tpu.memory_space<vmem>>, %arg4: memref<1x128xf32, #tpu.memory_space<vmem>>, %arg5: memref<128x128xbf16, #tpu.memory_space<vmem>>, %arg6: memref<1x128xf32, #tpu.memory_space<vmem>>, %arg7: memref<1x128xf32, #tpu.memory_space<vmem>>, %arg8: memref<48x128xf32, #tpu.memory_space<vmem>>) attributes {dimension_semantics = [#tpu.dimension_semantics<arbitrary>], iteration_bounds = array<i64: 1>, scalar_prefetch = 0 : i64, scratch_operands = 0 : i64, tpu.core_type = #tpu.core_type<tc>, window_params = [{pipeline_mode = #tpu.pipeline_mode<synchronous>, transform_indices = @transform_0, window_bounds = array<i64: 48, 128>}, {pipeline_mode = #tpu.pipeline_mode<synchronous>, transform_indices = @transform_1, window_bounds = array<i64: 128, 128>}, {pipeline_mode = #tpu.pipeline_mode<synchronous>, transform_indices = @transform_2, window_bounds = array<i64: 1, 128>}, {pipeline_mode = #tpu.pipeline_mode<synchronous>, transform_indices = @transform_3, window_bounds = array<i64: 1, 128>}, {pipeline_mode = #tpu.pipeline_mode<synchronous>, transform_indices = @transform_4, window_bounds = array<i64: 128, 128>}, {pipeline_mode = #tpu.pipeline_mode<synchronous>, transform_indices = @transform_5, window_bounds = array<i64: 1, 128>}, {pipeline_mode = #tpu.pipeline_mode<synchronous>, transform_indices = @transform_6, window_bounds = array<i64: 1, 128>}, {pipeline_mode = #tpu.pipeline_mode<synchronous>, transform_indices = @transform_7, window_bounds = array<i64: 48, 128>}]} {
    %c0 = arith.constant 0 : index
    %c0_0 = arith.constant 0 : index
    %0 = vector.load %arg1[%c0, %c0_0] : memref<48x128xbf16, #tpu.memory_space<vmem>>, vector<48x128xbf16>
    %c0_1 = arith.constant 0 : index
    %c0_2 = arith.constant 0 : index
    %1 = vector.load %arg2[%c0_1, %c0_2] : memref<128x128xbf16, #tpu.memory_space<vmem>>, vector<128x128xbf16>
    %cst = arith.constant dense<0.000000e+00> : vector<48x128xf32>
    %2 = tpu.matmul %0, %1, %cst {dimension_numbers = #tpu.dot_dimension_numbers<[1], [0], [0], [1], [0, 0, 1, 1], [], []>} : vector<48x128xbf16>, vector<128x128xbf16>, vector<48x128xf32> -> vector<48x128xf32>
    %cst_3 = arith.constant dense<0.000000e+00> : vector<128xf32>
    %3 = vector.multi_reduction <add>, %2, %cst_3 [0] : vector<48x128xf32> to vector<128xf32>
    %4 = vector.shape_cast %3 : vector<128xf32> to vector<1x128xf32>
    %cst_4 = arith.constant 4.800000e+01 : f32
    %5 = vector.broadcast %cst_4 : f32 to vector<1x128xf32>
    %6 = arith.divf %4, %5 : vector<1x128xf32>
    %7 = vector.broadcast %6 : vector<1x128xf32> to vector<48x128xf32>
    %8 = arith.subf %2, %7 : vector<48x128xf32>
    %9 = vector.broadcast %6 : vector<1x128xf32> to vector<48x128xf32>
    %10 = arith.subf %2, %9 : vector<48x128xf32>
    %11 = arith.mulf %8, %10 : vector<48x128xf32>
    %cst_5 = arith.constant dense<0.000000e+00> : vector<128xf32>
    %12 = vector.multi_reduction <add>, %11, %cst_5 [0] : vector<48x128xf32> to vector<128xf32>
    %13 = vector.shape_cast %12 : vector<128xf32> to vector<1x128xf32>
    %cst_6 = arith.constant 4.800000e+01 : f32
    %14 = vector.broadcast %cst_6 : f32 to vector<1x128xf32>
    %15 = arith.divf %13, %14 : vector<1x128xf32>
    %c0_7 = arith.constant 0 : index
    %c0_8 = arith.constant 0 : index
    %16 = vector.load %arg3[%c0_7, %c0_8] : memref<1x128xf32, #tpu.memory_space<vmem>>, vector<1x128xf32>
    %cst_9 = arith.constant 9.99999974E-6 : f32
    %17 = vector.broadcast %cst_9 : f32 to vector<1x128xf32>
    %18 = arith.addf %15, %17 : vector<1x128xf32>
    %19 = math.rsqrt %18 : vector<1x128xf32>
    %20 = arith.mulf %16, %19 : vector<1x128xf32>
    %21 = vector.broadcast %20 : vector<1x128xf32> to vector<48x128xf32>
    %22 = arith.mulf %2, %21 : vector<48x128xf32>
    %c0_10 = arith.constant 0 : index
    %c0_11 = arith.constant 0 : index
    %23 = vector.load %arg4[%c0_10, %c0_11] : memref<1x128xf32, #tpu.memory_space<vmem>>, vector<1x128xf32>
    %24 = arith.mulf %6, %20 : vector<1x128xf32>
    %25 = arith.subf %23, %24 : vector<1x128xf32>
    %26 = vector.broadcast %25 : vector<1x128xf32> to vector<48x128xf32>
    %27 = arith.addf %22, %26 : vector<48x128xf32>
    %cst_12 = arith.constant 0.000000e+00 : f32
    %28 = vector.broadcast %cst_12 : f32 to vector<48x128xf32>
    %29 = arith.maximumf %27, %28 : vector<48x128xf32>
    %30 = arith.truncf %29 : vector<48x128xf32> to vector<48x128xbf16>
    %c0_13 = arith.constant 0 : index
    %c0_14 = arith.constant 0 : index
    %31 = vector.load %arg5[%c0_13, %c0_14] : memref<128x128xbf16, #tpu.memory_space<vmem>>, vector<128x128xbf16>
    %cst_15 = arith.constant dense<0.000000e+00> : vector<48x128xf32>
    %32 = tpu.matmul %30, %31, %cst_15 {dimension_numbers = #tpu.dot_dimension_numbers<[1], [0], [0], [1], [0, 0, 1, 1], [], []>} : vector<48x128xbf16>, vector<128x128xbf16>, vector<48x128xf32> -> vector<48x128xf32>
    %cst_16 = arith.constant dense<0.000000e+00> : vector<128xf32>
    %33 = vector.multi_reduction <add>, %32, %cst_16 [0] : vector<48x128xf32> to vector<128xf32>
    %34 = vector.shape_cast %33 : vector<128xf32> to vector<1x128xf32>
    %cst_17 = arith.constant 4.800000e+01 : f32
    %35 = vector.broadcast %cst_17 : f32 to vector<1x128xf32>
    %36 = arith.divf %34, %35 : vector<1x128xf32>
    %37 = vector.broadcast %36 : vector<1x128xf32> to vector<48x128xf32>
    %38 = arith.subf %32, %37 : vector<48x128xf32>
    %39 = vector.broadcast %36 : vector<1x128xf32> to vector<48x128xf32>
    %40 = arith.subf %32, %39 : vector<48x128xf32>
    %41 = arith.mulf %38, %40 : vector<48x128xf32>
    %cst_18 = arith.constant dense<0.000000e+00> : vector<128xf32>
    %42 = vector.multi_reduction <add>, %41, %cst_18 [0] : vector<48x128xf32> to vector<128xf32>
    %43 = vector.shape_cast %42 : vector<128xf32> to vector<1x128xf32>
    %cst_19 = arith.constant 4.800000e+01 : f32
    %44 = vector.broadcast %cst_19 : f32 to vector<1x128xf32>
    %45 = arith.divf %43, %44 : vector<1x128xf32>
    %c0_20 = arith.constant 0 : index
    %c0_21 = arith.constant 0 : index
    %46 = vector.load %arg6[%c0_20, %c0_21] : memref<1x128xf32, #tpu.memory_space<vmem>>, vector<1x128xf32>
    %cst_22 = arith.constant 9.99999974E-6 : f32
    %47 = vector.broadcast %cst_22 : f32 to vector<1x128xf32>
    %48 = arith.addf %45, %47 : vector<1x128xf32>
    %49 = math.rsqrt %48 : vector<1x128xf32>
    %50 = arith.mulf %46, %49 : vector<1x128xf32>
    %51 = vector.broadcast %50 : vector<1x128xf32> to vector<48x128xf32>
    %52 = arith.mulf %32, %51 : vector<48x128xf32>
    %c0_23 = arith.constant 0 : index
    %c0_24 = arith.constant 0 : index
    %53 = vector.load %arg7[%c0_23, %c0_24] : memref<1x128xf32, #tpu.memory_space<vmem>>, vector<1x128xf32>
    %54 = arith.mulf %36, %50 : vector<1x128xf32>
    %55 = arith.subf %53, %54 : vector<1x128xf32>
    %56 = vector.broadcast %55 : vector<1x128xf32> to vector<48x128xf32>
    %57 = arith.addf %52, %56 : vector<48x128xf32>
    %c0_25 = arith.constant 0 : index
    %c0_26 = arith.constant 0 : index
    %58 = vector.load %arg8[%c0_25, %c0_26] : memref<48x128xf32, #tpu.memory_space<vmem>>, vector<48x128xf32>
    tpu.vector_store %arg8[%c0_25, %c0_26], %57 {strides = array<i32>} : memref<48x128xf32, #tpu.memory_space<vmem>>, vector<48x128xf32>,
    return
  }
  func.func @transform_0(%arg0: i32) -> (i32, i32) {
    %c0_i32 = arith.constant 0 : i32
    %c0_i32_0 = arith.constant 0 : i32
    %c0_i32_1 = arith.constant 0 : i32
    return %c0_i32, %c0_i32_0 : i32, i32
  }
  func.func @transform_1(%arg0: i32) -> (i32, i32) {
    %c0_i32 = arith.constant 0 : i32
    %c0_i32_0 = arith.constant 0 : i32
    %c0_i32_1 = arith.constant 0 : i32
    return %c0_i32, %c0_i32_0 : i32, i32
  }
  func.func @transform_2(%arg0: i32) -> (i32, i32) {
    %c0_i32 = arith.constant 0 : i32
    %c0_i32_0 = arith.constant 0 : i32
    %c0_i32_1 = arith.constant 0 : i32
    return %c0_i32, %c0_i32_0 : i32, i32
  }
  func.func @transform_3(%arg0: i32) -> (i32, i32) {
    %c0_i32 = arith.constant 0 : i32
    %c0_i32_0 = arith.constant 0 : i32
    %c0_i32_1 = arith.constant 0 : i32
    return %c0_i32, %c0_i32_0 : i32, i32
  }
  func.func @transform_4(%arg0: i32) -> (i32, i32) {
    %c0_i32 = arith.constant 0 : i32
    %c0_i32_0 = arith.constant 0 : i32
    %c0_i32_1 = arith.constant 0 : i32
    return %c0_i32, %c0_i32_0 : i32, i32
  }
  func.func @transform_5(%arg0: i32) -> (i32, i32) {
    %c0_i32 = arith.constant 0 : i32
    %c0_i32_0 = arith.constant 0 : i32
    %c0_i32_1 = arith.constant 0 : i32
    return %c0_i32, %c0_i32_0 : i32, i32
  }
  func.func @transform_6(%arg0: i32) -> (i32, i32) {
    %c0_i32 = arith.constant 0 : i32
    %c0_i32_0 = arith.constant 0 : i32
    %c0_i32_1 = arith.constant 0 : i32
    return %c0_i32, %c0_i32_0 : i32, i32
  }
  func.func @transform_7(%arg0: i32) -> (i32, i32) {
    %c0_i32 = arith.constant 0 : i32
    %c0_i32_0 = arith.constant 0 : i32
    %c0_i32_1 = arith.constant 0 : i32
    return %c0_i32, %c0_i32_0 : i32, i32
  }
}

</mosaic_0001>

<bundles_post_ra>
// kernel: projection_head_forward.1
= control target key start
LH: loop header
LB: loop body
LE: loop exit
PB: predicated region body
PF: predicated region fallthrough
CT: control target
= control target key end

     0   :  { %v569_v0 = vmov 0.0   ;;  %vm570_vm0 = vmmov 0   ;;  %s737_s1 = inlined_call_operand.vmem [shape: bf16[128,128], index: 1, kind: input, shape index: {}]   ;;  %s738_s0 = inlined_call_operand.vmem [shape: bf16[48,128], index: 0, kind: input, shape index: {}]   ;;  %s739_s4 = inlined_call_operand.vmem [shape: bf16[128,128], index: 4, kind: input, shape index: {}]   ;;  %s740_s2 = inlined_call_operand.vmem [shape: f32[1,128], index: 2, kind: input, shape index: {}]   ;;  %s741_s3 = inlined_call_operand.vmem [shape: f32[1,128], index: 3, kind: input, shape index: {}]   ;;  %s742_s5 = inlined_call_operand.vmem [shape: f32[1,128], index: 5, kind: input, shape index: {}]   ;;  %s743_s6 = inlined_call_operand.vmem [shape: f32[1,128], index: 6, kind: input, shape index: {}]   ;;  %s744_s7 = inlined_call_operand.vmem [shape: f32[48,128], index: 7, kind: output, shape index: {}]  }
   0x1   :  { %488 = vmatprep.subr.bf16.mxu0 %v569_v0  ;;  %v546_v1 = vld [vmem:[%s737_s1] sm:$0xff]   ;;  %504 = vmatprep.mubr.msk.bf16.mxu0 %vm570_vm0, %v569_v0  ;;  %v547_v2 = vld [vmem:[%s737_s1 + $0x8] sm:$0xff]   ;;  %v548_v3 = vld [vmem:[%s737_s1 + $0x10] sm:$0xff]  }
   0x2   :  { %516 = vmatprep.subr.bf16.mxu1 %v569_v0  ;;  %532 = vmatprep.mubr.msk.bf16.mxu1 %vm570_vm0, %v569_v0  ;;  %v549_v4 = vld [vmem:[%s737_s1 + $0x18] sm:$0xff]   ;;  %v550_v5 = vld [vmem:[%s737_s1 + $0x20] sm:$0xff]   ;;  %v551_v6 = vld [vmem:[%s737_s1 + $0x28] sm:$0xff]  }
   0x3   :  { %489 = vmatpush3.bf16.msra.mxu0 %v546_v1  ;;  %v552_v7 = vld [vmem:[%s737_s1 + $0x30] sm:$0xff]   ;;  %v553_v8 = vld [vmem:[%s737_s1 + $0x38] sm:$0xff]   ;;  %v554_v9 = vld [vmem:[%s738_s0] sm:$0xff]  }
   0x4   :  { %490 = vmatprep.subr.bf16.mxu0 %v569_v0  ;;  %v555_v10 = vld [vmem:[%s738_s0 + $0x8] sm:$0xff]   ;;  %v556_v11 = vld [vmem:[%s738_s0 + $0x10] sm:$0xff]   ;;  %v557_v12 = vld [vmem:[%s739_s4] sm:$0xff]  }
   0x5   :  { %517 = vmatpush3.bf16.msra.mxu1 %v557_v12  ;;  %v558_v13 = vld [vmem:[%s739_s4 + $0x8] sm:$0xff]   ;;  %v559_v14 = vld [vmem:[%s739_s4 + $0x10] sm:$0xff]   ;;  %v560_v15 = vld [vmem:[%s739_s4 + $0x18] sm:$0xff]  }
   0x6   :  { %518 = vmatprep.subr.bf16.mxu1 %v569_v0  ;;  %v561_v16 = vld [vmem:[%s739_s4 + $0x20] sm:$0xff]   ;;  %v562_v17 = vld [vmem:[%s739_s4 + $0x28] sm:$0xff]   ;;  %v563_v18 = vld [vmem:[%s739_s4 + $0x30] sm:$0xff]  }
   0x7   :  { %491 = vmatpush3.bf16.msra.mxu0 %v547_v2  ;;  %v564_v19 = vld [vmem:[%s739_s4 + $0x38] sm:$0xff]   ;;  %v225_v12 = vld [vmem:[%s741_s3] sm:$0x1] }
   0x8   :  { %492 = vmatprep.subr.bf16.mxu0 %v569_v0 }
   0x9   :  { %519 = vmatpush3.bf16.msra.mxu1 %v558_v13 }
   0xa   :  { %520 = vmatprep.subr.bf16.mxu1 %v569_v0 }
   0xb   :  { %493 = vmatpush3.bf16.msra.mxu0 %v548_v3 }
   0xc   :  { %494 = vmatprep.subr.bf16.mxu0 %v569_v0 }
   0xd   :  { %521 = vmatpush3.bf16.msra.mxu1 %v559_v14 }
   0xe   :  { %522 = vmatprep.subr.bf16.mxu1 %v569_v0 }
   0xf   :  { %495 = vmatpush3.bf16.msra.mxu0 %v549_v4 }
  0x10   :  { %496 = vmatprep.subr.bf16.mxu0 %v569_v0 }
  0x11   :  { %523 = vmatpush3.bf16.msra.mxu1 %v560_v15 }
  0x12   :  { %524 = vmatprep.subr.bf16.mxu1 %v569_v0 }
  0x13   :  { %497 = vmatpush3.bf16.msra.mxu0 %v550_v5 }
  0x14   :  { %498 = vmatprep.subr.bf16.mxu0 %v569_v0 }
  0x15   :  { %525 = vmatpush3.bf16.msra.mxu1 %v561_v16 }
  0x16   :  { %526 = vmatprep.subr.bf16.mxu1 %v569_v0 }
  0x17   :  { %499 = vmatpush3.bf16.msra.mxu0 %v551_v6  ;;  %v214_v6 = vlaneseq }
  0x18   :  { %500 = vmatprep.subr.bf16.mxu0 %v569_v0 }
  0x19   :  { %527 = vmatpush3.bf16.msra.mxu1 %v562_v17 }
  0x1a   :  { %528 = vmatprep.subr.bf16.mxu1 %v569_v0 }
  0x1b   :  { %501 = vmatpush3.bf16.msra.mxu0 %v552_v7  ;;  %v215_v7 = vshrl.u32 %v214_v6, 7 }
  0x1c   :  { %502 = vmatprep.subr.bf16.mxu0 %v569_v0 }
  0x1d   :  { %529 = vmatpush3.bf16.msra.mxu1 %v563_v18 }
  0x1e   :  { %530 = vmatprep.subr.bf16.mxu1 %v569_v0 }
  0x1f   :  { %503 = vmatpush3.bf16.msra.mxu0 %v553_v8  ;;  %v209_v8 = vld [vmem:[%s740_s2] sm:$0x1] }
  0x21   :  { %531 = vmatpush3.bf16.msra.mxu1 %v564_v19 }
  0x22   :  { %505 = vmatmul.mubr.bf16.vlgmr.msra.gmra.mrb[0].mxu0 %v554_v9  ;;  %v699_v9 = vsub.s32 0, %v215_v7 }
  0x23   :  { %508 = vmatprep.mubr.msk.bf16.mxu0 %vm570_vm0, %v569_v0 }
  0x2a   :  { %509 = vmatmul.mubr.bf16.gmra.mrb[4].mxu0 %v555_v10 }
  0x2b   :  { %512 = vmatprep.mubr.msk.bf16.mxu0 %vm570_vm0, %v569_v0 }
  0x32   :  { %513 = vmatmul.mubr.bf16.gmra.mrb[8].mxu0 %v556_v11 }
  0xf5   :  { %v692_v20 = vpop.f32.mrb[0].mxu0 }
  0xf6   :  { %v506_v21 = vpop.f32.mrb[1].mxu0 }
  0xf7   :  { %v152_v22 = vpop.f32.mrb[2].mxu0 }
  0xf8   :  { %v172_v23 = vadd.f32 %v152_v22, %v692_v20  ;;  %v507_v24 = vpop.f32.mrb[3].mxu0 }
  0xfd   :  { %v157_v25 = vpop.f32.mrb[4].mxu0 }
  0xfe   :  { %v173_v26 = vadd.f32 %v172_v23, %v157_v25  ;;  %v510_v27 = vpop.f32.mrb[5].mxu0 }
  0xff   :  { %v160_v28 = vpop.f32.mrb[6].mxu0 }
 0x100   :  { %v174_v29 = vadd.f32 %v173_v26, %v160_v28  ;;  %v511_v30 = vpop.f32.mrb[7].mxu0 }
 0x105   :  { %v165_v31 = vpop.f32.mrb[8].mxu0 }
 0x106   :  { %v175_v32 = vadd.f32 %v174_v29, %v165_v31  ;;  %v514_v33 = vpop.f32.mrb[9].mxu0 }
 0x107   :  { %v168_v34 = vpop.f32.mrb[10].mxu0 }
 0x108   :  { %v176_v35 = vadd.f32 %v175_v32, %v168_v34  ;;  %v515_v36 = vpop.f32.mrb[11].mxu0 }
 0x10a   :  { %v177_v37 = vrot.slane %v176_v35, 4 }
 0x10c   :  { %v178_v38 = vadd.f32 %v177_v37, %v176_v35 }
 0x10e   :  { %v179_v39 = vrot.slane %v178_v38, 2 }
 0x110   :  { %v180_v40 = vadd.f32 %v179_v39, %v178_v38 }
 0x112   :  { %v181_v41 = vrot.slane %v180_v40, 1 }
 0x114   :  { %v182_v42 = vadd.f32 %v181_v41, %v180_v40 }
 0x116   :  { %v184_v43 = vmul.f32 0.020833334, %v182_v42 }
 0x118   :  { %v185_v44 = vsub.f32 %v692_v20, %v184_v43  ;;  %v186_v45 = vsub.f32 %v152_v22, %v184_v43  ;;  %v187_v46 = vsub.f32 %v157_v25, %v184_v43  ;;  %v188_v47 = vsub.f32 %v160_v28, %v184_v43 }
 0x119   :  { %v189_v48 = vsub.f32 %v165_v31, %v184_v43  ;;  %v190_v49 = vsub.f32 %v168_v34, %v184_v43 }
 0x11a   :  { %v191_v50 = vmul.f32 %v185_v44, %v185_v44  ;;  %v192_v51 = vmul.f32 %v186_v45, %v186_v45  ;;  %v193_v52 = vmul.f32 %v187_v46, %v187_v46  ;;  %v194_v54 = vmul.f32 %v188_v47, %v188_v47 }
 0x11b   :  { %v195_v56 = vmul.f32 %v189_v48, %v189_v48  ;;  %v196_v58 = vmul.f32 %v190_v49, %v190_v49 }
 0x11c   :  { %v197_v53 = vadd.f32 %v192_v51, %v191_v50 }
 0x11e   :  { %v198_v55 = vadd.f32 %v197_v53, %v193_v52 }
 0x120   :  { %v199_v57 = vadd.f32 %v198_v55, %v194_v54 }
 0x122   :  { %v200_v59 = vadd.f32 %v199_v57, %v195_v56 }
 0x124   :  { %v201_v60 = vadd.f32 %v200_v59, %v196_v58 }
 0x126   :  { %v202_v61 = vrot.slane %v201_v60, 4 }
 0x128   :  { %v203_v62 = vadd.f32 %v202_v61, %v201_v60 }
 0x12a   :  { %v204_v63 = vrot.slane %v203_v62, 2 }
 0x12c   :  { %v205_v1 = vadd.f32 %v204_v63, %v203_v62 }
 0x12e   :  { %v206_v2 = vrot.slane %v205_v1, 1 }
 0x130   :  { %v207_v3 = vadd.f32 %v206_v2, %v205_v1 }
 0x132   :  { %v208_v4 = vmul.f32 0.020833334, %v207_v3 }
 0x134   :  { %v210_v5 = vadd.f32 1e-05, %v208_v4 }
 0x136   :  { %565 = vrsqrt.f32 %v210_v5 }
 0x140   :  { %v566_v10 = vpop.eup %565 }
 0x141   :  { %v212_v11 = vmul.f32 %v566_v10, %v209_v8 }
 0x143   :  { %v217_v13 = vrot.slane %v212_v11, %v699_v9  ;;  %v226_v14 = vmul.f32 %v212_v11, %v184_v43 }
 0x145   :  { %v224_v15 = vmul.f32 %v217_v13, %v168_v34  ;;  %v227_v16 = vsub.f32 %v225_v12, %v226_v14  ;;  %v219_v17 = vmul.f32 %v217_v13, %v692_v20  ;;  %v220_v18 = vmul.f32 %v217_v13, %v152_v22 }
 0x146   :  { %v221_v19 = vmul.f32 %v217_v13, %v157_v25  ;;  %v222_v21 = vmul.f32 %v217_v13, %v160_v28  ;;  %v223_v23 = vmul.f32 %v217_v13, %v165_v31 }
 0x147   :  { %v232_v24 = vrot.slane %v227_v16, %v699_v9 }
 0x149   :  { %v239_v26 = vadd.f32 %v232_v24, %v224_v15  ;;  %v234_v27 = vadd.f32 %v232_v24, %v219_v17  ;;  %v235_v29 = vadd.f32 %v232_v24, %v220_v18  ;;  %v236_v30 = vadd.f32 %v232_v24, %v221_v19 }
 0x14a   :  { %v237_v32 = vadd.f32 %v232_v24, %v222_v21  ;;  %v238_v33 = vadd.f32 %v232_v24, %v223_v23 }
 0x14b   :  { %v240_v35 = vmax.f32 %v234_v27, 0.0  ;;  %v241_v36 = vmax.f32 %v235_v29, 0.0  ;;  %v242_v37 = vmax.f32 %v236_v30, 0.0  ;;  %v245_v38 = vmax.f32 %v239_v26, 0.0  ;;  %v406_v27 = vld [vmem:[%s742_s5] sm:$0x1] }
 0x14c   :  { %v243_v34 = vmax.f32 %v237_v32, 0.0  ;;  %v244_v39 = vmax.f32 %v238_v33, 0.0  ;;  %v422_v33 = vld [vmem:[%s743_s6] sm:$0x1] }
 0x14d   :  { %v246_v40 = vpack.c.bf16 %v241_v36, %v240_v35 }
 0x14e   :  { %v247_v20 = vpack.c.bf16 %v243_v34, %v242_v37  ;;  %v248_v22 = vpack.c.bf16 %v245_v38, %v244_v39 }
 0x14f   :  { %533 = vmatmul.mubr.bf16.vlgmr.msra.gmra.mrb[0].mxu1 %v246_v40 }
 0x150   :  { %536 = vmatprep.mubr.msk.bf16.mxu1 %vm570_vm0, %v569_v0 }
 0x157   :  { %537 = vmatmul.mubr.bf16.gmra.mrb[4].mxu1 %v247_v20 }
 0x158   :  { %540 = vmatprep.mubr.msk.bf16.mxu1 %vm570_vm0, %v569_v0 }
 0x15f   :  { %541 = vmatmul.mubr.bf16.gmra.mrb[8].mxu1 %v248_v22 }
 0x222   :  { %v347_v25 = vpop.f32.mrb[0].mxu1 }
 0x223   :  { %v534_v28 = vpop.f32.mrb[1].mxu1 }
 0x224   :  { %v350_v31 = vpop.f32.mrb[2].mxu1 }
 0x225   :  { %v370_v41 = vadd.f32 %v350_v31, %v347_v25  ;;  %v535_v42 = vpop.f32.mrb[3].mxu1 }
 0x22a   :  { %v355_v43 = vpop.f32.mrb[4].mxu1 }
 0x22b   :  { %v371_v44 = vadd.f32 %v370_v41, %v355_v43  ;;  %v538_v45 = vpop.f32.mrb[5].mxu1 }
 0x22c   :  { %v358_v46 = vpop.f32.mrb[6].mxu1 }
 0x22d   :  { %v372_v47 = vadd.f32 %v371_v44, %v358_v46  ;;  %v539_v48 = vpop.f32.mrb[7].mxu1 }
 0x232   :  { %v363_v49 = vpop.f32.mrb[8].mxu1 }
 0x233   :  { %v373_v50 = vadd.f32 %v372_v47, %v363_v49  ;;  %v542_v51 = vpop.f32.mrb[9].mxu1 }
 0x234   :  { %v366_v52 = vpop.f32.mrb[10].mxu1 }
 0x235   :  { %v374_v53 = vadd.f32 %v373_v50, %v366_v52  ;;  %v543_v54 = vpop.f32.mrb[11].mxu1 }
 0x237   :  { %v375_v55 = vrot.slane %v374_v53, 4 }
 0x239   :  { %v376_v0 = vadd.f32 %v375_v55, %v374_v53 }
 0x23b   :  { %v377_v56 = vrot.slane %v376_v0, 2 }
 0x23d   :  { %v378_v57 = vadd.f32 %v377_v56, %v376_v0 }
 0x23f   :  { %v379_v58 = vrot.slane %v378_v57, 1 }
 0x241   :  { %v380_v59 = vadd.f32 %v379_v58, %v378_v57 }
 0x243   :  { %v381_v60 = vmul.f32 0.020833334, %v380_v59 }
 0x245   :  { %v382_v61 = vsub.f32 %v347_v25, %v381_v60  ;;  %v383_v62 = vsub.f32 %v350_v31, %v381_v60  ;;  %v384_v63 = vsub.f32 %v355_v43, %v381_v60  ;;  %v385_v1 = vsub.f32 %v358_v46, %v381_v60 }
 0x246   :  { %v386_v2 = vsub.f32 %v363_v49, %v381_v60  ;;  %v387_v3 = vsub.f32 %v366_v52, %v381_v60 }
 0x247   :  { %v388_v4 = vmul.f32 %v382_v61, %v382_v61  ;;  %v389_v5 = vmul.f32 %v383_v62, %v383_v62  ;;  %v390_v6 = vmul.f32 %v384_v63, %v384_v63  ;;  %v391_v8 = vmul.f32 %v385_v1, %v385_v1 }
 0x248   :  { %v392_v11 = vmul.f32 %v386_v2, %v386_v2  ;;  %v393_v13 = vmul.f32 %v387_v3, %v387_v3 }
 0x249   :  { %v394_v7 = vadd.f32 %v389_v5, %v388_v4 }
 0x24b   :  { %v395_v10 = vadd.f32 %v394_v7, %v390_v6 }
 0x24d   :  { %v396_v12 = vadd.f32 %v395_v10, %v391_v8 }
 0x24f   :  { %v397_v14 = vadd.f32 %v396_v12, %v392_v11 }
 0x251   :  { %v398_v15 = vadd.f32 %v397_v14, %v393_v13 }
 0x253   :  { %v399_v16 = vrot.slane %v398_v15, 4 }
 0x255   :  { %v400_v17 = vadd.f32 %v399_v16, %v398_v15 }
 0x257   :  { %v401_v18 = vrot.slane %v400_v17, 2 }
 0x259   :  { %v402_v19 = vadd.f32 %v401_v18, %v400_v17 }
 0x25b   :  { %v403_v21 = vrot.slane %v402_v19, 1 }
 0x25d   :  { %v404_v23 = vadd.f32 %v403_v21, %v402_v19 }
 0x25f   :  { %v405_v24 = vmul.f32 0.020833334, %v404_v23 }
 0x261   :  { %v407_v26 = vadd.f32 1e-05, %v405_v24 }
 0x263   :  { %567 = vrsqrt.f32 %v407_v26 }
 0x26d   :  { %v568_v29 = vpop.eup %567 }
 0x26e   :  { %v409_v30 = vmul.f32 %v568_v29, %v406_v27 }
 0x270   :  { %v414_v32 = vrot.slane %v409_v30, %v699_v9  ;;  %v423_v35 = vmul.f32 %v409_v30, %v381_v60 }
 0x272   :  { %v416_v36 = vmul.f32 %v414_v32, %v347_v25  ;;  %v417_v37 = vmul.f32 %v414_v32, %v350_v31  ;;  %v418_v38 = vmul.f32 %v414_v32, %v355_v43  ;;  %v419_v34 = vmul.f32 %v414_v32, %v358_v46 }
 0x273   :  { %v420_v39 = vmul.f32 %v414_v32, %v363_v49  ;;  %v421_v40 = vmul.f32 %v414_v32, %v366_v52  ;;  %v424_v20 = vsub.f32 %v422_v33, %v423_v35 }
 0x275   :  { %v429_v22 = vrot.slane %v424_v20, %v699_v9 }
 0x277   :  { %v431_v28 = vadd.f32 %v429_v22, %v416_v36  ;;  %v432_v41 = vadd.f32 %v429_v22, %v417_v37  ;;  %v433_v42 = vadd.f32 %v429_v22, %v418_v38  ;;  %v434_v44 = vadd.f32 %v429_v22, %v419_v34 }
 0x278   :  { %v435_v45 = vadd.f32 %v429_v22, %v420_v39  ;;  %v436_v47 = vadd.f32 %v429_v22, %v421_v40 }
 0x279   :  { %437 = vst [vmem:[%s744_s7] sm:$0xff] %v431_v28  ;;  %438 = vst [vmem:[%s744_s7 + $0x8] sm:$0xff] %v432_v41 }
 0x27a   :  { %439 = vst [vmem:[%s744_s7 + $0x10] sm:$0xff] %v433_v42  ;;  %440 = vst [vmem:[%s744_s7 + $0x18] sm:$0xff] %v434_v44 }
 0x27b   :  { %441 = vst [vmem:[%s744_s7 + $0x20] sm:$0xff] %v435_v45  ;;  %442 = vst [vmem:[%s744_s7 + $0x28] sm:$0xff] %v436_v47 }

</bundles_post_ra>
